<compile_context>
chip_gen: v7x
topology: tpu7x:2x2x1
jax: 0.10.0
libtpu: 0.0.40
codegen_flags: <defaults>
</compile_context>

<pallas_src>
import functools

import numpy as np

import jax
import jax.numpy as jnp
from jax.experimental import pallas as pl
from jax.experimental.pallas import tpu as pltpu


def _round_up(x, m):
    return ((x + m - 1) // m) * m


def _bucket_edges(row, col, attention, *, n_tiles, tn, te, nh_pad):
    """Host-side (numpy) edge bucketing.

    Sorts edges by (dst_tile, src_tile), splits each non-empty bucket into te-sized
    chunks (padded with sentinel -1 ids / zero attention), and appends one empty chunk
    per destination tile that has no incoming edges so its output block still gets
    zero-initialised and written.  Returns int32 per-chunk metadata plus the chunked
    edge arrays laid out for dense DMAs.
    """
    row = np.asarray(row, np.int32).reshape(-1)
    col = np.asarray(col, np.int32).reshape(-1)
    attention = np.asarray(attention, np.float32)
    E, nhead = attention.shape

    if E > 0:
        dst_t = (row // tn).astype(np.int64)
        src_t = (col // tn).astype(np.int64)
        bucket = dst_t * n_tiles + src_t
        order = np.argsort(bucket, kind="stable")
        srow, scol, satt = row[order], col[order], attention[order]
        sbucket = bucket[order]
        uniq, inverse, counts = np.unique(sbucket, return_inverse=True, return_counts=True)
        starts = np.zeros(uniq.shape[0], np.int64)
        starts[1:] = np.cumsum(counts)[:-1]
        rank = np.arange(E, dtype=np.int64) - starts[inverse]       # position within bucket
        nchunks_b = (counts + te - 1) // te
        chunk_base = np.zeros(uniq.shape[0], np.int64)
        chunk_base[1:] = np.cumsum(nchunks_b)[:-1]
        edge_chunk = chunk_base[inverse] + rank // te
        edge_slot = rank % te
        num_edge_chunks = int(nchunks_b.sum())
        chunk_dst = np.repeat((uniq // n_tiles).astype(np.int32), nchunks_b)
        chunk_src = np.repeat((uniq % n_tiles).astype(np.int32), nchunks_b)
    else:
        num_edge_chunks = 0
        chunk_dst = np.zeros((0,), np.int32)
        chunk_src = np.zeros((0,), np.int32)
        srow = scol = np.zeros((0,), np.int32)
        satt = np.zeros((0, nhead), np.float32)
        edge_chunk = edge_slot = np.zeros((0,), np.int64)

    # Every destination tile must be visited at least once (to zero its output block).
    present = np.unique(chunk_dst) if num_edge_chunks > 0 else np.zeros((0,), np.int32)
    missing = np.setdiff1d(np.arange(n_tiles, dtype=np.int32), present)
    chunk_dst = np.concatenate([chunk_dst, missing]).astype(np.int32)
    chunk_src = np.concatenate([chunk_src, np.zeros_like(missing)]).astype(np.int32)
    num_chunks = int(chunk_dst.shape[0])

    # Chunks of a given destination tile are contiguous (sorted by (dst, src)):
    # init/final flags drive the accumulator zeroing / output writeback in-kernel.
    init_flag = np.ones((num_chunks,), np.int32)
    final_flag = np.ones((num_chunks,), np.int32)
    if num_chunks > 1:
        same = chunk_dst[1:] == chunk_dst[:-1]
        init_flag[1:][same] = 0
        final_flag[:-1][same] = 0

    # Chunked edge arrays: row as a (1, C*te) lane vector, col as a (C*te, 1) sublane
    # vector, attention as contiguous (C*te, nh_pad) blocks. Sentinel -1 / 0 padding.
    row_ck = np.full((1, num_chunks * te), -1, np.int32)
    col_ck = np.full((num_chunks * te, 1), -1, np.int32)
    att_ck = np.zeros((num_chunks * te, nh_pad), np.float32)
    if E > 0:
        flat = (edge_chunk * te + edge_slot).astype(np.int64)
        row_ck[0, flat] = srow
        col_ck[flat, 0] = scol
        att_ck[flat, :nhead] = satt

    return chunk_dst, chunk_src, init_flag, final_flag, row_ck, col_ck, att_ck


def _mhspmm_kernel(dst_ref, src_ref, init_ref, final_ref,
                   row_ref, col_ref, att_ref, expand_ref, h_ref,
                   out_ref, acc_ref, *, compute_dtype):
    # Scalar prefetch (SMEM): dst_ref/src_ref/init_ref/final_ref, each (num_chunks,) i32
    # row_ref: (1, TE) i32      col_ref: (TE, 1) i32
    # att_ref: (TE, NHp) f32    expand_ref: (NHp, HDp) f32 (one-hot head -> head*d)
    # h_ref:   (TN, HDp)        out_ref: (TN, HDp)         acc_ref: (TN, HDp) f32
    c = pl.program_id(0)

    @pl.when(init_ref[c] == 1)
    def _():
        acc_ref[...] = jnp.zeros_like(acc_ref)

    te = col_ref.shape[0]
    tn = h_ref.shape[0]

    # Fold the tile offsets into the small id vectors (cheap VPU work); bucketing
    # guarantees real edges land in [0, tn) and sentinel -1 never matches the iota.
    col_local = col_ref[...] - src_ref[c] * tn            # (TE, 1)
    row_local = row_ref[...] - dst_ref[c] * tn            # (1, TE)

    h_tile = h_ref[...].astype(compute_dtype)             # (TN, HDp)

    # Gather h[col] for this (src tile, edge chunk) pair: one-hot matmul on the MXU.
    src_iota = jax.lax.broadcasted_iota(jnp.int32, (te, tn), 1)
    sel_col = (src_iota == col_local).astype(compute_dtype)                    # (TE, TN)
    gathered = jnp.dot(sel_col, h_tile, preferred_element_type=jnp.float32)    # (TE, HDp)

    # Broadcast per-edge per-head attention onto the fused head*d lane dim via a tiny
    # one-hot expansion matmul (kept in f32; it is ~3% of the MACs).
    att_exp = jnp.dot(att_ref[...], expand_ref[...],
                      preferred_element_type=jnp.float32)                      # (TE, HDp)
    weighted = (gathered * att_exp).astype(compute_dtype)                      # (TE, HDp)

    # Scatter-add by row into the destination tile. Selector built pre-transposed as
    # (TN, TE) so the contraction runs over the lane axis (no XLU transpose).
    dst_iota = jax.lax.broadcasted_iota(jnp.int32, (tn, te), 0)
    sel_row_t = (dst_iota == row_local).astype(compute_dtype)                  # (TN, TE)
    acc_ref[...] += jnp.dot(sel_row_t, weighted, preferred_element_type=jnp.float32)

    @pl.when(final_ref[c] == 1)
    def _():
        out_ref[...] = acc_ref[...].astype(out_ref.dtype)


def multi_head_spmm(row, col, attention, h, *, tn=512, te=512, use_bf16=True):
    """row, col: (E,) int; attention: (E, nhead); h: (N, nhead, d) -> (N, nhead*d).

    With use_bf16=True (default) the gather/scatter matmul operands (h values and
    attention*h products) are rounded to bf16; selectors are exact.  Pass
    use_bf16=False for f32-exact results.
    """
    N, nhead, d = h.shape
    E = row.shape[0]
    hd = nhead * d
    assert attention.shape == (E, nhead)

    # Clamp tiles to the padded problem size; keep them sublane/lane aligned.
    tn = min(tn, _round_up(max(N, 1), 128))
    te = min(te, _round_up(max(E, 1), 128))
    assert tn % 128 == 0 and te % 128 == 0, "tile sizes must be multiples of 128"

    n_pad = _round_up(max(N, 1), tn)
    n_tiles = n_pad // tn
    nh_pad = _round_up(nhead, 8)          # sublane-aligned K for the expansion matmul
    hd_pad = _round_up(hd, 128)           # lane-dense fused head*d output (unmasked vst)

    (chunk_dst, chunk_src, init_flag, final_flag,
     row_ck, col_ck, att_ck) = _bucket_edges(
        row, col, attention, n_tiles=n_tiles, tn=tn, te=te, nh_pad=nh_pad)
    num_chunks = int(chunk_dst.shape[0])

    # Fused-head node features, zero-padded to (n_pad, hd_pad).
    h2 = jnp.zeros((n_pad, hd_pad), h.dtype).at[:N, :hd].set(h.reshape(N, hd))
    # One-hot head -> head*d expansion matrix (tiny, stays resident in VMEM).
    expand = jnp.zeros((nh_pad, hd_pad), jnp.float32).at[:nhead, :hd].set(
        jnp.repeat(jnp.eye(nhead, dtype=jnp.float32), d, axis=1))

    compute_dtype = jnp.bfloat16 if use_bf16 else jnp.float32

    out = pl.pallas_call(
        functools.partial(_mhspmm_kernel, compute_dtype=compute_dtype),
        out_shape=jax.ShapeDtypeStruct((n_pad, hd_pad), h.dtype),
        grid_spec=pltpu.PrefetchScalarGridSpec(
            num_scalar_prefetch=4,
            grid=(num_chunks,),
            in_specs=[
                pl.BlockSpec((1, te), lambda c, dst, src, ini, fin: (0, c)),            # row
                pl.BlockSpec((te, 1), lambda c, dst, src, ini, fin: (c, 0)),            # col
                pl.BlockSpec((te, nh_pad), lambda c, dst, src, ini, fin: (c, 0)),       # attention
                pl.BlockSpec((nh_pad, hd_pad), lambda c, dst, src, ini, fin: (0, 0)),   # expansion
                pl.BlockSpec((tn, hd_pad), lambda c, dst, src, ini, fin: (src[c], 0)),  # h src tile
            ],
            out_specs=pl.BlockSpec((tn, hd_pad), lambda c, dst, src, ini, fin: (dst[c], 0)),
            scratch_shapes=[pltpu.VMEM((tn, hd_pad), jnp.float32)],
        ),
        compiler_params=pltpu.CompilerParams(
            dimension_semantics=("arbitrary",),   # output tile is revisited across chunks
            vmem_limit_bytes=48 * 1024 * 1024,
        ),
    )(jnp.asarray(chunk_dst), jnp.asarray(chunk_src),
      jnp.asarray(init_flag), jnp.asarray(final_flag),
      jnp.asarray(row_ck), jnp.asarray(col_ck), jnp.asarray(att_ck),
      expand, h2)

    return out[:N, :hd]


def _reference(row, col, attention, h):
    # pure-JAX reference mirroring spmm_scatter per head + concat over heads
    gathered = h[col]                              # (E, nhead, d)
    weighted = gathered * attention[:, :, None]    # (E, nhead, d)
    out = jax.ops.segment_sum(weighted, row, num_segments=h.shape[0])  # (N, nhead, d)
    return out.reshape(h.shape[0], -1)


if __name__ == "__main__":
    key = jax.random.PRNGKey(0)
    k1, k2, k3, k4 = jax.random.split(key, 4)

    # Small but non-trivial shapes: 3 node tiles at tn=128 (N=300 -> n_pad=384),
    # ~9 (dst_tile, src_tile) buckets, nhead*d = 128 lane-dense fused output.
    N, E, nhead, d = 300, 900, 4, 32

    row = jax.random.randint(k1, (E,), 0, N, dtype=jnp.int32)
    col = jax.random.randint(k2, (E,), 0, N, dtype=jnp.int32)
    attention = jax.random.uniform(k3, (E, nhead), dtype=jnp.float32)
    h = jax.random.normal(k4, (N, nhead, d), dtype=jnp.float32)

    ref = _reference(row, col, attention, h)

    # Exact path (f32 one-hot matmuls): tight tolerance.
    out_f32 = multi_head_spmm(row, col, attention, h, tn=128, te=128, use_bf16=False)
    out_f32 = jax.block_until_ready(out_f32)
    assert out_f32.shape == (N, nhead * d)
    assert jnp.allclose(out_f32, ref, atol=1e-4, rtol=1e-4), \
        float(jnp.max(jnp.abs(out_f32 - ref)))

    # Fast path (bf16 MXU, default): value operands rounded to bf16 -> bf16-level tolerance.
    out_bf16 = multi_head_spmm(row, col, attention, h, tn=128, te=128, use_bf16=True)
    out_bf16 = jax.block_until_ready(out_bf16)
    rel_err = float(jnp.max(jnp.abs(out_bf16 - ref)) / (jnp.max(jnp.abs(ref)) + 1e-6))
    assert rel_err < 3e-2, rel_err

    print("KERNEL_OK")
</pallas_src>

<mosaic_0001>
module attributes {stable_mosaic.version = 11 : i64} {
  func.func @_mhspmm_kernel(%arg0: i32, %arg1: memref<13xi32, #tpu.memory_space<smem>>, %arg2: memref<13xi32, #tpu.memory_space<smem>>, %arg3: memref<13xi32, #tpu.memory_space<smem>>, %arg4: memref<13xi32, #tpu.memory_space<smem>>, %arg5: memref<1x128xi32, #tpu.memory_space<vmem>>, %arg6: memref<128x1xi32, #tpu.memory_space<vmem>>, %arg7: memref<128x8xf32, #tpu.memory_space<vmem>>, %arg8: memref<8x128xf32, #tpu.memory_space<vmem>>, %arg9: memref<128x128xf32, #tpu.memory_space<vmem>>, %arg10: memref<128x128xf32, #tpu.memory_space<vmem>>, %arg11: memref<128x128xf32, #tpu.memory_space<vmem>>) attributes {dimension_semantics = [#tpu.dimension_semantics<arbitrary>], iteration_bounds = array<i64: 13>, scalar_prefetch = 4 : i64, scratch_operands = 1 : i64, tpu.core_type = #tpu.core_type<tc>, window_params = [{transform_indices = @transform_0, window_bounds = array<i64: 1, 128>}, {transform_indices = @transform_1, window_bounds = array<i64: 128, 1>}, {transform_indices = @transform_2, window_bounds = array<i64: 128, 8>}, {pipeline_mode = #tpu.pipeline_mode<synchronous>, transform_indices = @transform_3, window_bounds = array<i64: 8, 128>}, {transform_indices = @transform_4, window_bounds = array<i64: 128, 128>}, {transform_indices = @transform_5, window_bounds = array<i64: 128, 128>}]} {
    %0 = arith.index_cast %arg0 : i32 to index
    %1 = memref.load %arg3[%0] : memref<13xi32, #tpu.memory_space<smem>>
    %c1_i32 = arith.constant 1 : i32
    %2 = arith.cmpi eq, %1, %c1_i32 : i32
    %3 = arith.extui %2 : i1 to i32
    %c0_i32 = arith.constant 0 : i32
    %4 = arith.cmpi ne, %3, %c0_i32 : i32
    scf.if %4 {
      %cst_18 = arith.constant 0.000000e+00 : f32
      %42 = vector.broadcast %cst_18 : f32 to vector<128x128xf32>
      %c0_19 = arith.constant 0 : index
      %c0_20 = arith.constant 0 : index
      %43 = vector.load %arg11[%c0_19, %c0_20] : memref<128x128xf32, #tpu.memory_space<vmem>>, vector<128x128xf32>
      tpu.vector_store %arg11[%c0_19, %c0_20], %42 {strides = array<i32>} : memref<128x128xf32, #tpu.memory_space<vmem>>, vector<128x128xf32>,
    } else {
    }
    %c0 = arith.constant 0 : index
    %c0_0 = arith.constant 0 : index
    %5 = vector.load %arg6[%c0, %c0_0] : memref<128x1xi32, #tpu.memory_space<vmem>>, vector<128x1xi32>
    %6 = arith.index_cast %arg0 : i32 to index
    %7 = memref.load %arg2[%6] : memref<13xi32, #tpu.memory_space<smem>>
    %c128_i32 = arith.constant 128 : i32
    %8 = arith.muli %7, %c128_i32 : i32
    %9 = vector.broadcast %8 : i32 to vector<128x1xi32>
    %10 = arith.subi %5, %9 : vector<128x1xi32>
    %c0_1 = arith.constant 0 : index
    %c0_2 = arith.constant 0 : index
    %11 = vector.load %arg5[%c0_1, %c0_2] : memref<1x128xi32, #tpu.memory_space<vmem>>, vector<1x128xi32>
    %12 = arith.index_cast %arg0 : i32 to index
    %13 = memref.load %arg1[%12] : memref<13xi32, #tpu.memory_space<smem>>
    %c128_i32_3 = arith.constant 128 : i32
    %14 = arith.muli %13, %c128_i32_3 : i32
    %15 = vector.broadcast %14 : i32 to vector<1x128xi32>
    %16 = arith.subi %11, %15 : vector<1x128xi32>
    %c0_4 = arith.constant 0 : index
    %c0_5 = arith.constant 0 : index
    %17 = vector.load %arg9[%c0_4, %c0_5] : memref<128x128xf32, #tpu.memory_space<vmem>>, vector<128x128xf32>
    %18 = tpu.iota {dimensions = array<i32: 1>} : vector<128x128xi32>
    %19 = vector.broadcast %10 : vector<128x1xi32> to vector<128x128xi32>
    %20 = arith.cmpi eq, %18, %19 : vector<128x128xi32>
    %21 = arith.extui %20 : vector<128x128xi1> to vector<128x128xi32>
    %22 = arith.sitofp %21 : vector<128x128xi32> to vector<128x128xf32>
    %cst = arith.constant dense<0.000000e+00> : vector<128x128xf32>
    %23 = tpu.matmul %22, %17, %cst {dimension_numbers = #tpu.dot_dimension_numbers<[1], [0], [0], [1], [0, 0, 1, 1], [], []>} : vector<128x128xf32>, vector<128x128xf32>, vector<128x128xf32> -> vector<128x128xf32>
    %c0_6 = arith.constant 0 : index
    %c0_7 = arith.constant 0 : index
    %24 = vector.load %arg7[%c0_6, %c0_7] : memref<128x8xf32, #tpu.memory_space<vmem>>, vector<128x8xf32>
    %c0_8 = arith.constant 0 : index
    %c0_9 = arith.constant 0 : index
    %25 = vector.load %arg8[%c0_8, %c0_9] : memref<8x128xf32, #tpu.memory_space<vmem>>, vector<8x128xf32>
    %cst_10 = arith.constant dense<0.000000e+00> : vector<128x128xf32>
    %26 = tpu.matmul %24, %25, %cst_10 {dimension_numbers = #tpu.dot_dimension_numbers<[1], [0], [0], [1], [0, 0, 1, 1], [], []>} : vector<128x8xf32>, vector<8x128xf32>, vector<128x128xf32> -> vector<128x128xf32>
    %27 = arith.mulf %23, %26 : vector<128x128xf32>
    %28 = tpu.iota {dimensions = array<i32: 0>} : vector<128x128xi32>
    %29 = vector.broadcast %16 : vector<1x128xi32> to vector<128x128xi32>
    %30 = arith.cmpi eq, %28, %29 : vector<128x128xi32>
    %31 = arith.extui %30 : vector<128x128xi1> to vector<128x128xi32>
    %32 = arith.sitofp %31 : vector<128x128xi32> to vector<128x128xf32>
    %c0_11 = arith.constant 0 : index
    %c0_12 = arith.constant 0 : index
    %33 = vector.load %arg11[%c0_11, %c0_12] : memref<128x128xf32, #tpu.memory_space<vmem>>, vector<128x128xf32>
    %cst_13 = arith.constant dense<0.000000e+00> : vector<128x128xf32>
    %34 = tpu.matmul %32, %27, %cst_13 {dimension_numbers = #tpu.dot_dimension_numbers<[1], [0], [0], [1], [0, 0, 1, 1], [], []>} : vector<128x128xf32>, vector<128x128xf32>, vector<128x128xf32> -> vector<128x128xf32>
    %35 = arith.addf %33, %34 : vector<128x128xf32>
    %c0_14 = arith.constant 0 : index
    %c0_15 = arith.constant 0 : index
    %36 = vector.load %arg11[%c0_14, %c0_15] : memref<128x128xf32, #tpu.memory_space<vmem>>, vector<128x128xf32>
    tpu.vector_store %arg11[%c0_14, %c0_15], %35 {strides = array<i32>} : memref<128x128xf32, #tpu.memory_space<vmem>>, vector<128x128xf32>,
    %37 = arith.index_cast %arg0 : i32 to index
    %38 = memref.load %arg4[%37] : memref<13xi32, #tpu.memory_space<smem>>
    %c1_i32_16 = arith.constant 1 : i32
    %39 = arith.cmpi eq, %38, %c1_i32_16 : i32
    %40 = arith.extui %39 : i1 to i32
    %c0_i32_17 = arith.constant 0 : i32
    %41 = arith.cmpi ne, %40, %c0_i32_17 : i32
    scf.if %41 {
      %c0_18 = arith.constant 0 : index
      %c0_19 = arith.constant 0 : index
      %42 = vector.load %arg11[%c0_18, %c0_19] : memref<128x128xf32, #tpu.memory_space<vmem>>, vector<128x128xf32>
      %c0_20 = arith.constant 0 : index
      %c0_21 = arith.constant 0 : index
      %43 = vector.load %arg10[%c0_20, %c0_21] : memref<128x128xf32, #tpu.memory_space<vmem>>, vector<128x128xf32>
      tpu.vector_store %arg10[%c0_20, %c0_21], %42 {strides = array<i32>} : memref<128x128xf32, #tpu.memory_space<vmem>>, vector<128x128xf32>,
    } else {
    }
    return
  }
  func.func @transform_0(%arg0: i32, %arg1: memref<13xi32, #tpu.memory_space<smem>>, %arg2: memref<13xi32, #tpu.memory_space<smem>>, %arg3: memref<13xi32, #tpu.memory_space<smem>>, %arg4: memref<13xi32, #tpu.memory_space<smem>>) -> (i32, i32) {
    %c0_i32 = arith.constant 0 : i32
    %c0_i32_0 = arith.constant 0 : i32
    return %c0_i32, %arg0 : i32, i32
  }
  func.func @transform_1(%arg0: i32, %arg1: memref<13xi32, #tpu.memory_space<smem>>, %arg2: memref<13xi32, #tpu.memory_space<smem>>, %arg3: memref<13xi32, #tpu.memory_space<smem>>, %arg4: memref<13xi32, #tpu.memory_space<smem>>) -> (i32, i32) {
    %c0_i32 = arith.constant 0 : i32
    %c0_i32_0 = arith.constant 0 : i32
    return %arg0, %c0_i32 : i32, i32
  }
  func.func @transform_2(%arg0: i32, %arg1: memref<13xi32, #tpu.memory_space<smem>>, %arg2: memref<13xi32, #tpu.memory_space<smem>>, %arg3: memref<13xi32, #tpu.memory_space<smem>>, %arg4: memref<13xi32, #tpu.memory_space<smem>>) -> (i32, i32) {
    %c0_i32 = arith.constant 0 : i32
    %c0_i32_0 = arith.constant 0 : i32
    return %arg0, %c0_i32 : i32, i32
  }
  func.func @transform_3(%arg0: i32, %arg1: memref<13xi32, #tpu.memory_space<smem>>, %arg2: memref<13xi32, #tpu.memory_space<smem>>, %arg3: memref<13xi32, #tpu.memory_space<smem>>, %arg4: memref<13xi32, #tpu.memory_space<smem>>) -> (i32, i32) {
    %c0_i32 = arith.constant 0 : i32
    %c0_i32_0 = arith.constant 0 : i32
    %c0_i32_1 = arith.constant 0 : i32
    return %c0_i32, %c0_i32_0 : i32, i32
  }
  func.func @transform_4(%arg0: i32, %arg1: memref<13xi32, #tpu.memory_space<smem>>, %arg2: memref<13xi32, #tpu.memory_space<smem>>, %arg3: memref<13xi32, #tpu.memory_space<smem>>, %arg4: memref<13xi32, #tpu.memory_space<smem>>) -> (i32, i32) {
    %0 = arith.index_cast %arg0 : i32 to index
    %1 = memref.load %arg2[%0] : memref<13xi32, #tpu.memory_space<smem>>
    %c0_i32 = arith.constant 0 : i32
    %c0_i32_0 = arith.constant 0 : i32
    return %1, %c0_i32 : i32, i32
  }
  func.func @transform_5(%arg0: i32, %arg1: memref<13xi32, #tpu.memory_space<smem>>, %arg2: memref<13xi32, #tpu.memory_space<smem>>, %arg3: memref<13xi32, #tpu.memory_space<smem>>, %arg4: memref<13xi32, #tpu.memory_space<smem>>) -> (i32, i32) {
    %0 = arith.index_cast %arg0 : i32 to index
    %1 = memref.load %arg1[%0] : memref<13xi32, #tpu.memory_space<smem>>
    %c0_i32 = arith.constant 0 : i32
    %c0_i32_0 = arith.constant 0 : i32
    return %1, %c0_i32 : i32, i32
  }
}

</mosaic_0001>

<bundles_post_ra>
// kernel: tpu_custom_call.1
= control target key start
LH: loop header
LB: loop body
LE: loop exit
PB: predicated region body
PF: predicated region fallthrough
CT: control target
= control target key end

     0   :  { %s2319_s0 = inlined_call_operand.vmem [shape: s32[13], index: 0, kind: input, shape index: {}]   ;;  %s2320_s4 = inlined_call_operand.vmem [shape: s32[1,1664], index: 4, kind: input, shape index: {}]   ;;  %s2321_s5 = inlined_call_operand.vmem [shape: s32[1664,1], index: 5, kind: input, shape index: {}]   ;;  %s2322_s6 = inlined_call_operand.vmem [shape: f32[1664,8], index: 6, kind: input, shape index: {}]   ;;  %s2323_s7 = inlined_call_operand.vmem [shape: f32[8,128], index: 7, kind: input, shape index: {}]   ;;  %s2324_s8 = inlined_call_operand.vmem [shape: f32[384,128], index: 8, kind: input, shape index: {}]   ;;  %s2325_s9 = inlined_call_operand.hbm [shape: f32[384,128], index: 9, kind: output, shape index: {}]   ;;  %s2326_s1 = inlined_call_operand.vmem [shape: s32[13], index: 1, kind: input, shape index: {}]   ;;  %s2327_s2 = inlined_call_operand.vmem [shape: s32[13], index: 2, kind: input, shape index: {}]   ;;  %s2328_s3 = inlined_call_operand.vmem [shape: s32[13], index: 3, kind: input, shape index: {}]  }
   0x1   :  { %s14_s11 = sshll.u32 %s2319_s0, 4  ;;  %s18_s14 = sshll.u32 %s2326_s1, 4  ;;  %s15_s11 = int_to_ptr.vmem [resolvable:$true] %s14_s11  ;;  %s19_s14 = int_to_ptr.vmem [resolvable:$true] %s18_s14 }
   0x2   :  { %s1708_s15 = scalar_lea.vmem %s15_s11, 16  ;;  %p1713_p1 = scmp.lt.s32.totalorder %s15_s11, %s15_s11 }
   0x3   :  { %p1709_p0 = scmp.ne.s32.totalorder %s15_s11, %s1708_s15  ;;  %p1714_p2 = scmp.lt.s32.totalorder %s1708_s15, %s1708_s15 }
   0x5   :  { %p1715_p3 = por %p1714_p2, %p1713_p1 }
   0x7   :  { %p1716_p4 = pnand %p1715_p3, %p1709_p0 }
   0x9   :  { %1719 = shalt.err (!%p1716_p4)  }
   0xa   :  { %s1822_s16 = smov [#allocation4]   ;;  %s1720_s17 = scalar_lea.vmem %s19_s14, 16 }
   0xb   :  { %17 = dma.vmem_to_smem %s15_s11, 16, %s1822_s16, [#allocation3] }
   0xc   :  { %p1721_p5 = scmp.ne.s32.totalorder %s19_s14, %s1720_s17  ;;  %p1725_p6 = scmp.lt.s32.totalorder %s19_s14, %s19_s14 }
   0xd   :  { %p1726_p7 = scmp.lt.s32.totalorder %s1720_s17, %s1720_s17 }
   0xf   :  { %p1727_p8 = por %p1726_p7, %p1725_p6 }
  0x11   :  { %p1728_p9 = pnand %p1727_p8, %p1721_p5 }
  0x13   :  { %1731 = shalt.err (!%p1728_p9)  }
  0x14   :  { %s1823_s0 = smov [#allocation5]   ;;  %s22_s19 = sshll.u32 %s2327_s2, 4  ;;  %s23_s19 = int_to_ptr.vmem [resolvable:$true] %s22_s19 }
  0x15   :  { %21 = dma.vmem_to_smem %s19_s14, 16, %s1823_s0, [#allocation3] }
  0x16   :  { %s26_s22 = sshll.u32 %s2328_s3, 4  ;;  %s1732_s23 = scalar_lea.vmem %s23_s19, 16  ;;  %s27_s22 = int_to_ptr.vmem [resolvable:$true] %s26_s22 }
  0x17   :  { %p1733_p10 = scmp.ne.s32.totalorder %s23_s19, %s1732_s23  ;;  %p1737_p11 = scmp.lt.s32.totalorder %s23_s19, %s23_s19 }
  0x18   :  { %p1738_p12 = scmp.lt.s32.totalorder %s1732_s23, %s1732_s23 }
  0x1a   :  { %p1739_p13 = por %p1738_p12, %p1737_p11 }
  0x1c   :  { %p1740_p0 = pnand %p1739_p13, %p1733_p10 }
  0x1e   :  { %1743 = shalt.err (!%p1740_p0)  }
  0x1f   :  { %s1824_s24 = smov [#allocation6]   ;;  %s1744_s25 = scalar_lea.vmem %s27_s22, 16 }
  0x20   :  { %25 = dma.vmem_to_smem %s23_s19, 16, %s1824_s24, [#allocation3] }
  0x21   :  { %p1745_p1 = scmp.ne.s32.totalorder %s27_s22, %s1744_s25  ;;  %p1749_p2 = scmp.lt.s32.totalorder %s27_s22, %s27_s22 }
  0x22   :  { %p1750_p3 = scmp.lt.s32.totalorder %s1744_s25, %s1744_s25 }
  0x24   :  { %p1751_p4 = por %p1750_p3, %p1749_p2 }
  0x26   :  { %p1752_p5 = pnand %p1751_p4, %p1745_p1 }
  0x28   :  { %1755 = shalt.err (!%p1752_p5)  }
  0x29   :  { %s1825_s2 = smov [#allocation7]  }
  0x2a   :  { %29 = dma.vmem_to_smem %s27_s22, 16, %s1825_s2, [#allocation3] }
  0x2b   :  { %1800 = dma.done.wait [#allocation3], 64 }
  0x2c   :  { %1801 = vsyncadd [#allocation3], 4294967232 }
  0x2d   :  { %31 = sfence }
  0x2e   :  { %32 = vsyncpa [#allocation9], 0 }
  0x2f   :  { %34 = vsyncpa [#allocation9 + $0x1], 0  ;;  %s1894_s3 = smov 0   ;;  %s1896_s26 = smov 0  }
  0x30   :  { %s1898_s27 = smov 0   ;;  %s1900_s28 = smov 0  }
  0x31 LB: > { %2331 = sst [smem:[#allocation13_spill]] %s1816_s27  ;;  %s1915_s29 = sadd.s32 4294967295, %s1820_s28   ;;  %s1820_s28 = sphi %s1900_s28, %s2340_s28   ;;  %s1816_s27 = sphi %s1898_s27, %s2337_s27   ;;  %s1812_s26 = sphi %s1896_s26, %s2339_s26   ;;  %s1808_s3 = sphi %s1894_s3, %s2338_s3  }
  0x32   : > { %s1272_s30 = sadd.s32 4294967294, %s1820_s28   ;;  %s1919_s10 = sadd.s32 1, %s1820_s28  }
  0x33   : > { %s171_s11 = sld [smem:[#allocation4 + %s1820_s28]]  ;;  %p186_p6 = scmp.ne.s32.totalorder %s1816_s27, %s1812_s26 }
  0x34   : > { %s172_s12 = sld [smem:[#allocation4 + %s1919_s10]]  ;;  %p187_p7 = scmp.eq.s32.totalorder %s1915_s29, 12 }
  0x35   : > { %p192_p8 = scmp.ne.s32.totalorder %s1812_s26, %s1808_s3  ;;  %p193_p9 = scmp.eq.s32.totalorder %s1272_s30, 12 }
  0x36   : > { %p1928_p10 = por %p187_p7, %p186_p6  ;;  %p1275_p11 = scmp.ge.s32.totalorder %s1820_s28, 1 }
  0x37   : > { %p1933_p12 = por %p193_p9, %p192_p8  ;;  %p249_p13 = scmp.lt.s32.totalorder %s1820_s28, 14 }
  0x38   : > { %s176_s15 = sadd.s32 1, %s1816_s27 }
  0x39   : > { %p250_p0 = pnand %p1275_p11, %p249_p13 }
  0x3a   : > { %s173_s16 = ssub.s32 %s171_s11, %s172_s12  ;;  %s2329_s0 = sand.u32 (!%p250_p0), 1, %s1812_s26  }
  0x3b   : > { %p174_p1 = scmp.eq.s32.totalorder %s173_s16, 0  ;;  %253 = sbr.rel (%p250_p0) target bundleno = 753 (0x2f1), region = 40 }
  0x3c   : > { %p291_p2 = scmp.lt.s32.totalorder (!%p250_p0), %s1915_s29, 12  ;;  %s1276_s1 = sshll.u32 (!%p250_p0), %s2329_s0, 7 }
  0x3d   : > { %s1940_s17 = scalar_select %p174_p1, %s1816_s27, %s176_s15  }
  0x3e   : > { %s1277_s18 = sshll.u32 (!%p250_p0), %s1915_s29, 4  ;;  %s306_s23 = sld [smem:[#allocation5 + %s1915_s29]] (!%p250_p0) }
  0x3f   : > { %2334 = sst [smem:[#allocation14_spill]] %s1940_s17  ;;  %p295_p3 = scmp.lt.s32.totalorder (!%p250_p0), %s1277_s18, 207 }
  0x40   : > { %s316_s25 = sld [smem:[#allocation6 + %s1915_s29]] (!%p250_p0) }
  0x42   : > { %s1948_s19 = scalar_select %p291_p2, %s1915_s29, 12 }
  0x43   : > { %s2342_s18 = smov (!%p295_p3, %s1277_s18), 207 }
  0x44   : > { %s293_s22 = scalar_lea.vmem %s2320_s4, %s1948_s19  ;;  %s1278_s24 = sshll.u32 %s2342_s18, 3 }
  0x45   : > { %s1959_s11 = scalar_lea.vmem %s2321_s5, %s1278_s24  ;;  %s1964_s16 = scalar_lea.vmem %s2322_s6, %s1278_s24 }
  0x46   : > { %s1281_s0 = sshll.u32 %s306_s23, 4  ;;  %s1971_s18 = scalar_lea.vmem [#allocation8], %s1276_s1 }
  0x47   : > { %p308_p4 = scmp.lt.s32.totalorder %s1281_s0, 47  ;;  %p1283_p5 = scmp.ne.s32.totalorder %s316_s25, 1 }
  0x48   : > { %v1826_v0 = vmov (!%p1283_p5), 0.0  }
  0x49   : > { %s2344_s0 = smov (!%p308_p4, %s1281_s0), 47  ;;  %320 = sbr.rel (%p1283_p5) target bundleno = 82 (0x52), region = 44 }
  0x4a   : > { %s1282_s17 = sshll.u32 %s2344_s0, 3  ;;  %321 = vst [vmem:[#allocation2] sm:$0xff] (!%p1283_p5), %v1826_v0  ;;  %322 = vst [vmem:[#allocation2 + $0x8] sm:$0xff] (!%p1283_p5), %v1826_v0 }
  0x4b   : > { %s1969_s21 = scalar_lea.vmem %s2324_s8, %s1282_s17  ;;  %323 = vst [vmem:[#allocation2 + $0x10] sm:$0xff] (!%p1283_p5), %v1826_v0  ;;  %324 = vst [vmem:[#allocation2 + $0x18] sm:$0xff] (!%p1283_p5), %v1826_v0 }
  0x4c   : > { %325 = vst [vmem:[#allocation2 + $0x20] sm:$0xff] (!%p1283_p5), %v1826_v0  ;;  %326 = vst [vmem:[#allocation2 + $0x28] sm:$0xff] (!%p1283_p5), %v1826_v0 }
  0x4d   : > { %327 = vst [vmem:[#allocation2 + $0x30] sm:$0xff] (!%p1283_p5), %v1826_v0  ;;  %328 = vst [vmem:[#allocation2 + $0x38] sm:$0xff] (!%p1283_p5), %v1826_v0 }
  0x4e   : > { %329 = vst [vmem:[#allocation2 + $0x40] sm:$0xff] (!%p1283_p5), %v1826_v0  ;;  %330 = vst [vmem:[#allocation2 + $0x48] sm:$0xff] (!%p1283_p5), %v1826_v0 }
  0x4f   : > { %331 = vst [vmem:[#allocation2 + $0x50] sm:$0xff] (!%p1283_p5), %v1826_v0  ;;  %332 = vst [vmem:[#allocation2 + $0x58] sm:$0xff] (!%p1283_p5), %v1826_v0 }
  0x50   : > { %333 = vst [vmem:[#allocation2 + $0x60] sm:$0xff] %v1826_v0  ;;  %334 = vst [vmem:[#allocation2 + $0x68] sm:$0xff] %v1826_v0 }
  0x51   : > { %335 = vst [vmem:[#allocation2 + $0x70] sm:$0xff] %v1826_v0  ;;  %336 = vst [vmem:[#allocation2 + $0x78] sm:$0xff] %v1826_v0 }
  0x52 PF: > { %s353_s27 = sld [smem:[#allocation5 + %s1915_s29]]  ;;  %v1827_v1 = vmov 0   ;;  %v339_v2 = vld [vmem:[%s1959_s11 + $0x10] sm:$0xff]  ;;  %v337_v3 = vld [vmem:[%s1959_s11] sm:$0xff]  ;;  %v378_v5 = vld [vmem:[%s1969_s21 + $0x8] sm:$0xff]  ;;  %vm653_vm0 = vcmask 64512  }
  0x53   : > { %1707 = vset.pattern.permute.xlu1 %v1827_v1  ;;  %1706 = vset.pattern.permute.xlu0 %v1827_v1  ;;  %v377_v4 = vld [vmem:[%s1969_s21] sm:$0xff]  ;;  %v379_v7 = vld [vmem:[%s1969_s21 + $0x10] sm:$0xff]  ;;  %v380_v8 = vld [vmem:[%s1969_s21 + $0x18] sm:$0xff]  ;;  %s373_s23 = sld [smem:[#allocation4 + %s1915_s29]] }
  0x54   : > { %v1592_v6 = vpack.c.bf16 %v378_v5, %v377_v4  ;;  %v340_v10 = vld [vmem:[%s1959_s11 + $0x18] sm:$0xff]  ;;  %v338_v11 = vld [vmem:[%s1959_s11 + $0x8] sm:$0xff]  ;;  %v1596_v12 = vpack.c.bf16 %v380_v8, %v379_v7  ;;  %v381_v15 = vld [vmem:[%s1969_s21 + $0x20] sm:$0xff]  ;;  %s2244_s19 = sld [smem:[#allocation7 + %s1915_s29]] }
  0x55   : > { %v382_v16 = vld [vmem:[%s1969_s21 + $0x28] sm:$0xff]  ;;  %v341_v20 = vld [vmem:[%s1959_s11 + $0x20] sm:$0xff]  ;;  %v383_v23 = vld [vmem:[%s1969_s21 + $0x30] sm:$0xff] }
  0x56   : > { %1593 = vmatprep.subr.bf16.mxu0 %v1592_v6  ;;  %v342_v19 = vld [vmem:[%s1959_s11 + $0x28] sm:$0xff]  ;;  %v652_v21 = vld [vmem:[%s2323_s7] sm:$0xff]  ;;  %v1600_v22 = vpack.c.bf16 %v382_v16, %v381_v15  ;;  %v384_v24 = vld [vmem:[%s1969_s21 + $0x38] sm:$0xff]  ;;  %v1828_v16 = vmov 1.0  }
  0x57   : > { %1595 = vmatpush3.bf16.msra.mxu0 %v1592_v6  ;;  %1510 = vmatprep.subr.mxu1 %v652_v21  ;;  %v636_v25 = vld [vmem:[%s1964_s16] sm:$0xff]  ;;  %v637_v26 = vld [vmem:[%s1964_s16 + $0x8] sm:$0xff]  ;;  %v344_v29 = vld [vmem:[%s1959_s11 + $0x38] sm:$0xff]  ;;  %v1604_v31 = vpack.c.bf16 %v384_v24, %v383_v23 }
  0x58   : > { %s1284_s17 = sshll.u32 %s353_s27, 7  ;;  %1597 = vmatprep.subr.bf16.mxu0 %v1596_v12  ;;  %1511 = vmatpush3.msra.mxu1 %v652_v21  ;;  %v343_v30 = vld [vmem:[%s1959_s11 + $0x30] sm:$0xff]  ;;  %v385_v32 = vld [vmem:[%s1969_s21 + $0x40] sm:$0xff]  ;;  %v386_v33 = vld [vmem:[%s1969_s21 + $0x48] sm:$0xff] }
  0x59   : > { %v1980_v9 = vstv %s1284_s17  ;;  %1512 = vmatprep.mubr.msk.f32.mxu1 %vm653_vm0, %v636_v25  ;;  %v638_v34 = vld [vmem:[%s1964_s16 + $0x10] sm:$0xff]  ;;  %v639_v35 = vld [vmem:[%s1964_s16 + $0x18] sm:$0xff]  ;;  %v346_v38 = vld [vmem:[%s1959_s11 + $0x48] sm:$0xff]  ;;  %v1608_v40 = vpack.c.bf16 %v386_v33, %v385_v32  ;;  %s1285_s24 = sshll.u32 %s373_s23, 7 }
  0x5a   : > { %v358_v13 = vsub.s32 %v339_v2, %v1980_v9  ;;  %v356_v14 = vsub.s32 %v337_v3, %v1980_v9  ;;  %v359_v17 = vsub.s32 %v340_v10, %v1980_v9  ;;  %v357_v18 = vsub.s32 %v338_v11, %v1980_v9  ;;  %1513 = vmatmul.mubr.msk.f32.vlgmr.msra.gmra.mrb[0].mxu1 %vm653_vm0, %v637_v26  ;;  %v345_v39 = vld [vmem:[%s1959_s11 + $0x40] sm:$0xff]  ;;  %v387_v41 = vld [vmem:[%s1969_s21 + $0x50] sm:$0xff]  ;;  %v388_v42 = vld [vmem:[%s1969_s21 + $0x58] sm:$0xff]  ;;  %p1366_p6 = scmp.ne.s32.totalorder %s2244_s19, 1 }
  0x5b   : > { %1599 = vmatpush3.bf16.msra.mxu0 %v1596_v12  ;;  %v361_v27 = vsub.s32 %v342_v19, %v1980_v9  ;;  %v360_v28 = vsub.s32 %v341_v20, %v1980_v9  ;;  %1515 = vmatprep.mubr.msk.f32.mxu1 %vm653_vm0, %v638_v34  ;;  %v363_v36 = vsub.s32 %v344_v29, %v1980_v9  ;;  %v640_v43 = vld [vmem:[%s1964_s16 + $0x20] sm:$0xff]  ;;  %v641_v44 = vld [vmem:[%s1964_s16 + $0x28] sm:$0xff]  ;;  %v348_v47 = vld [vmem:[%s1959_s11 + $0x58] sm:$0xff] }
  0x5c   : > { %402 = vperm.xlu1 %1707, %v358_v13   ;;  %396 = vperm.xlu0 %1706, %v356_v14   ;;  %v362_v37 = vsub.s32 %v343_v30, %v1980_v9  ;;  %v365_v45 = vsub.s32 %v346_v38, %v1980_v9  ;;  %v364_v46 = vsub.s32 %v345_v39, %v1980_v9  ;;  %v347_v48 = vld [vmem:[%s1959_s11 + $0x50] sm:$0xff]  ;;  %v389_v50 = vld [vmem:[%s1969_s21 + $0x60] sm:$0xff]  ;;  %v390_v51 = vld [vmem:[%s1969_s21 + $0x68] sm:$0xff]  ;;  %v393_v13 = vlaneseq }
  0x5d   : > { %1601 = vmatprep.subr.bf16.mxu0 %v1600_v22  ;;  %v1612_v49 = vpack.c.bf16 %v388_v42, %v387_v41  ;;  %v642_v52 = vld [vmem:[%s1964_s16 + $0x30] sm:$0xff]  ;;  %v643_v53 = vld [vmem:[%s1964_s16 + $0x38] sm:$0xff]  ;;  %v367_v54 = vsub.s32 %v348_v47, %v1980_v9  ;;  %v366_v55 = vsub.s32 %v347_v48, %v1980_v9  ;;  %v350_v56 = vld [vmem:[%s1959_s11 + $0x68] sm:$0xff]  ;;  %v1616_v58 = vpack.c.bf16 %v390_v51, %v389_v50 }
  0x5e   : > { %1516 = vmatmul.mubr.msk.f32.gmra.mrb[2].mxu1 %vm653_vm0, %v639_v35  ;;  %v349_v57 = vld [vmem:[%s1959_s11 + $0x60] sm:$0xff]  ;;  %v391_v59 = vld [vmem:[%s1969_s21 + $0x70] sm:$0xff]  ;;  %v392_v60 = vld [vmem:[%s1969_s21 + $0x78] sm:$0xff]  ;;  %v369_v63 = vsub.s32 %v350_v56, %v1980_v9 }
  0x5f   : > { %1603 = vmatpush3.bf16.msra.mxu0 %v1600_v22  ;;  %1518 = vmatprep.mubr.msk.f32.mxu1 %vm653_vm0, %v640_v43  ;;  %v644_v61 = vld [vmem:[%s1964_s16 + $0x40] sm:$0xff]  ;;  %v645_v62 = vld [vmem:[%s1964_s16 + $0x48] sm:$0xff]  ;;  %v368_v0 = vsub.s32 %v349_v57, %v1980_v9  ;;  %v352_v1 = vld [vmem:[%s1959_s11 + $0x78] sm:$0xff]  ;;  %v1620_v3 = vpack.c.bf16 %v392_v60, %v391_v59 }
  0x60   : > { %405 = vperm.xlu1 %1707, %v359_v17   ;;  %399 = vperm.xlu0 %1706, %v357_v18   ;;  %v351_v2 = vld [vmem:[%s1959_s11 + $0x70] sm:$0xff]  ;;  %v647_v5 = vld [vmem:[%s1964_s16 + $0x58] sm:$0xff]  ;;  %v371_v6 = vsub.s32 %v352_v1, %v1980_v9  ;;  %v648_v8 = vld [vmem:[%s1964_s16 + $0x60] sm:$0xff] }
  0x61   : > { %1605 = vmatprep.subr.bf16.mxu0 %v1604_v31  ;;  %v646_v4 = vld [vmem:[%s1964_s16 + $0x50] sm:$0xff]  ;;  %v370_v7 = vsub.s32 %v351_v2, %v1980_v9  ;;  %v649_v10 = vld [vmem:[%s1964_s16 + $0x68] sm:$0xff]  ;;  %v651_v12 = vld [vmem:[%s1964_s16 + $0x78] sm:$0xff]  ;;  %v394_v9 = vand.u32 127, %v393_v13 }
  0x62   : > { %1519 = vmatmul.mubr.msk.f32.gmra.mrb[4].mxu1 %vm653_vm0, %v641_v44  ;;  %v650_v11 = vld [vmem:[%s1964_s16 + $0x70] sm:$0xff]  ;;  %v372_v48 = vld [vmem:[%s293_s22] sm:$0x1] }
  0x63   : > { %1607 = vmatpush3.bf16.msra.mxu0 %v1604_v31  ;;  %1521 = vmatprep.mubr.msk.f32.mxu1 %vm653_vm0, %v642_v52 }
  0x64   : > { %411 = vperm.xlu1 %1707, %v361_v27   ;;  %408 = vperm.xlu0 %1706, %v360_v28  }
  0x65   : > { %1609 = vmatprep.subr.bf16.mxu0 %v1608_v40 }
  0x66   : > { %1522 = vmatmul.mubr.msk.f32.gmra.mrb[6].mxu1 %vm653_vm0, %v643_v53 }
  0x67   : > { %1611 = vmatpush3.bf16.msra.mxu0 %v1608_v40  ;;  %1524 = vmatprep.mubr.msk.f32.mxu1 %vm653_vm0, %v644_v61 }
  0x68   : > { %417 = vperm.xlu1 %1707, %v363_v36   ;;  %414 = vperm.xlu0 %1706, %v362_v37  }
  0x69   : > { %1613 = vmatprep.subr.bf16.mxu0 %v1612_v49 }
  0x6a   : > { %1525 = vmatmul.mubr.msk.f32.gmra.mrb[8].mxu1 %vm653_vm0, %v645_v62 }
  0x6b   : > { %1615 = vmatpush3.bf16.msra.mxu0 %v1612_v49  ;;  %1527 = vmatprep.mubr.msk.f32.mxu1 %vm653_vm0, %v646_v4  ;;  %v375_v49 = vstv %s1285_s24 }
  0x6c   : > { %423 = vperm.xlu1 %1707, %v365_v45   ;;  %420 = vperm.xlu0 %1706, %v364_v46   ;;  %v864_v45 = vshrl.u32 %v393_v13, 7  ;;  %v376_v50 = vsub.s32 %v372_v48, %v375_v49 }
  0x6d   : > { %1617 = vmatprep.subr.bf16.mxu0 %v1616_v58 }
  0x6e   : > { %1528 = vmatmul.mubr.msk.f32.gmra.mrb[10].mxu1 %vm653_vm0, %v647_v5  ;;  %v882_v51 = vsub.s32 0, %v864_v45  ;;  %v2109_v53 = vadd.s32 8, %v864_v45  ;;  %v2123_v56 = vadd.s32 32, %v864_v45  ;;  %v2125_v57 = vadd.s32 40, %v864_v45 }
  0x6f   : > { %1619 = vmatpush3.bf16.msra.mxu0 %v1616_v58  ;;  %1530 = vmatprep.mubr.msk.f32.mxu1 %vm653_vm0, %v648_v8  ;;  %v2131_v58 = vadd.s32 48, %v864_v45  ;;  %v2133_v59 = vadd.s32 56, %v864_v45  ;;  %v2139_v60 = vadd.s32 64, %v864_v45  ;;  %v2141_v61 = vadd.s32 72, %v864_v45 }
  0x70   : > { %429 = vperm.xlu1 %1707, %v367_v54   ;;  %426 = vperm.xlu0 %1706, %v366_v55   ;;  %v2107_v52 = vrot.slane %v376_v50, %v882_v51  ;;  %v2115_v54 = vadd.s32 16, %v864_v45  ;;  %v2117_v55 = vadd.s32 24, %v864_v45  ;;  %v2147_v62 = vadd.s32 80, %v864_v45  ;;  %v935_v51 = vld [vmem:[#allocation2 + $0x18] sm:$0xff] }
  0x71   : > { %1621 = vmatprep.subr.bf16.mxu0 %v1620_v3  ;;  %v2157_v1 = vadd.s32 104, %v864_v45  ;;  %v2163_v2 = vadd.s32 112, %v864_v45 }
  0x72   : > { %1531 = vmatmul.mubr.msk.f32.gmra.mrb[12].mxu1 %vm653_vm0, %v649_v10 }
  0x73   : > { %1623 = vmatpush3.bf16.msra.mxu0 %v1620_v3  ;;  %1533 = vmatprep.mubr.msk.f32.mxu1 %vm653_vm0, %v650_v11  ;;  %v2165_v3 = vadd.s32 120, %v864_v45 }
  0x74   : > { %435 = vperm.xlu1 %1707, %v369_v63   ;;  %432 = vperm.xlu0 %1706, %v368_v0   ;;  %v2149_v63 = vadd.s32 88, %v864_v45  ;;  %v2155_v0 = vadd.s32 96, %v864_v45 }
  0x76   : > { %1534 = vmatmul.mubr.msk.f32.gmra.mrb[14].mxu1 %vm653_vm0, %v651_v12 }
  0x78   : > { %441 = vperm.xlu1 %1707, %v371_v6   ;;  %438 = vperm.xlu0 %1706, %v370_v7  }
  0xdb   : > { %v403_v14 = vpop.permute.xlu1 %402  ;;  %v397_v15 = vpop.permute.xlu0 %396 }
  0xdc   : > { %vm443_vm1 = vcmp.eq.s32.totalorder %v394_v9, %v397_v15  ;;  %vm445_vm2 = vcmp.eq.s32.totalorder %v394_v9, %v403_v14 }
  0xdd   : > { %1486 = vmatprep.mubr.msk.f32.mxu0 %vm443_vm1, %v1828_v16  ;;  %vm884_vm1 = vcmp.eq.s32.totalorder %v864_v45, %v2107_v52 }
  0xde   : > { %1568 = vmatprep.mubr.msk.f32.mxu1 %vm884_vm1, %v1828_v16 }
  0xdf   : > { %v406_v17 = vpop.permute.xlu1 %405  ;;  %v400_v18 = vpop.permute.xlu0 %399 }
  0xe0   : > { %vm444_vm3 = vcmp.eq.s32.totalorder %v394_v9, %v400_v18  ;;  %vm446_vm4 = vcmp.eq.s32.totalorder %v394_v9, %v406_v17 }
  0xe1   : > { %1487 = vmatmul.mubr.msk.f32.vlgmr.msra.gmra.mrb[0].mxu0 %vm444_vm3, %v1828_v16  ;;  %vm886_vm3 = vcmp.eq.s32.totalorder %v2115_v54, %v2107_v52 }
  0xe2   : > { %1489 = vmatprep.mubr.msk.f32.mxu0 %vm445_vm2, %v1828_v16  ;;  %vm885_vm2 = vcmp.eq.s32.totalorder %v2109_v53, %v2107_v52  ;;  %v934_v53 = vld [vmem:[#allocation2 + $0x10] sm:$0xff] }
  0xe3   : > { %v412_v19 = vpop.permute.xlu1 %411  ;;  %v409_v20 = vpop.permute.xlu0 %408 }
  0xe4   : > { %vm447_vm5 = vcmp.eq.s32.totalorder %v394_v9, %v409_v20  ;;  %vm448_vm6 = vcmp.eq.s32.totalorder %v394_v9, %v412_v19 }
  0xe5   : > { %1490 = vmatmul.mubr.msk.f32.gmra.mrb[2].mxu0 %vm446_vm4, %v1828_v16  ;;  %vm887_vm4 = vcmp.eq.s32.totalorder %v2117_v55, %v2107_v52 }
  0xe6   : > { %1492 = vmatprep.mubr.msk.f32.mxu0 %vm447_vm5, %v1828_v16  ;;  %vm888_vm5 = vcmp.eq.s32.totalorder %v2123_v56, %v2107_v52 }
  0xe7   : > { %v418_v21 = vpop.permute.xlu1 %417  ;;  %v415_v22 = vpop.permute.xlu0 %414 }
  0xe8   : > { %vm449_vm7 = vcmp.eq.s32.totalorder %v394_v9, %v415_v22  ;;  %vm450_vm8 = vcmp.eq.s32.totalorder %v394_v9, %v418_v21 }
  0xe9   : > { %1493 = vmatmul.mubr.msk.f32.gmra.mrb[4].mxu0 %vm448_vm6, %v1828_v16  ;;  %vm889_vm6 = vcmp.eq.s32.totalorder %v2125_v57, %v2107_v52 }
  0xea   : > { %1495 = vmatprep.mubr.msk.f32.mxu0 %vm449_vm7, %v1828_v16  ;;  %vm890_vm7 = vcmp.eq.s32.totalorder %v2131_v58, %v2107_v52  ;;  %v937_v58 = vld [vmem:[#allocation2 + $0x28] sm:$0xff] }
  0xeb   : > { %v424_v23 = vpop.permute.xlu1 %423  ;;  %v421_v24 = vpop.permute.xlu0 %420 }
  0xec   : > { %vm451_vm9 = vcmp.eq.s32.totalorder %v394_v9, %v421_v24  ;;  %vm452_vm10 = vcmp.eq.s32.totalorder %v394_v9, %v424_v23 }
  0xed   : > { %1496 = vmatmul.mubr.msk.f32.gmra.mrb[6].mxu0 %vm450_vm8, %v1828_v16  ;;  %vm891_vm8 = vcmp.eq.s32.totalorder %v2133_v59, %v2107_v52 }
  0xee   : > { %1498 = vmatprep.mubr.msk.f32.mxu0 %vm451_vm9, %v1828_v16  ;;  %vm892_vm9 = vcmp.eq.s32.totalorder %v2139_v60, %v2107_v52 }
  0xef   : > { %v430_v25 = vpop.permute.xlu1 %429  ;;  %v427_v26 = vpop.permute.xlu0 %426 }
  0xf0   : > { %vm453_vm11 = vcmp.eq.s32.totalorder %v394_v9, %v427_v26  ;;  %vm454_vm12 = vcmp.eq.s32.totalorder %v394_v9, %v430_v25 }
  0xf1   : > { %1499 = vmatmul.mubr.msk.f32.gmra.mrb[8].mxu0 %vm452_vm10, %v1828_v16  ;;  %vm893_vm10 = vcmp.eq.s32.totalorder %v2141_v61, %v2107_v52 }
  0xf2   : > { %1501 = vmatprep.mubr.msk.f32.mxu0 %vm453_vm11, %v1828_v16  ;;  %vm894_vm11 = vcmp.eq.s32.totalorder %v2147_v62, %v2107_v52  ;;  %v939_v62 = vld [vmem:[#allocation2 + $0x38] sm:$0xff] }
  0xf3   : > { %v436_v27 = vpop.permute.xlu1 %435  ;;  %v433_v28 = vpop.permute.xlu0 %432 }
  0xf4   : > { %vm455_vm13 = vcmp.eq.s32.totalorder %v394_v9, %v433_v28  ;;  %vm456_vm14 = vcmp.eq.s32.totalorder %v394_v9, %v436_v27 }
  0xf5   : > { %1502 = vmatmul.mubr.msk.f32.gmra.mrb[10].mxu0 %vm454_vm12, %v1828_v16  ;;  %vm895_vm12 = vcmp.eq.s32.totalorder %v2149_v63, %v2107_v52  ;;  %v938_v63 = vld [vmem:[#allocation2 + $0x30] sm:$0xff] }
  0xf6   : > { %1504 = vmatprep.mubr.msk.f32.mxu0 %vm455_vm13, %v1828_v16  ;;  %vm896_vm13 = vcmp.eq.s32.totalorder %v2155_v0, %v2107_v52 }
  0xf7   : > { %v439_v29 = vpop.permute.xlu0 %438  ;;  %v442_v30 = vpop.permute.xlu1 %441 }
  0xf8   : > { %vm457_vm15 = vcmp.eq.s32.totalorder %v394_v9, %v439_v29  ;;  %vm458_vm0 = vcmp.eq.s32.totalorder %v394_v9, %v442_v30 }
  0xf9   : > { %1505 = vmatmul.mubr.msk.f32.gmra.mrb[12].mxu0 %vm456_vm14, %v1828_v16  ;;  %vm897_vm14 = vcmp.eq.s32.totalorder %v2157_v1, %v2107_v52 }
  0xfa   : > { %1507 = vmatprep.mubr.msk.f32.mxu0 %vm457_vm15, %v1828_v16  ;;  %vm898_vm15 = vcmp.eq.s32.totalorder %v2163_v2, %v2107_v52 }
  0xfd   : > { %1508 = vmatmul.mubr.msk.f32.gmra.mrb[14].mxu0 %vm458_vm0, %v1828_v16  ;;  %vm899_vm0 = vcmp.eq.s32.totalorder %v2165_v3, %v2107_v52  ;;  %v936_v52 = vld [vmem:[#allocation2 + $0x20] sm:$0xff] }
 0x12d   : > { %v1514_v31 = vpop.f32.mrb[0].mxu1 }
 0x12e   : > { %v768_v32 = vpop.f32.mrb[1].mxu1 }
 0x131   : > { %v1517_v33 = vpop.f32.mrb[2].mxu1 }
 0x132   : > { %v778_v34 = vpop.f32.mrb[3].mxu1 }
 0x135   : > { %v2076_v35 = vpop.f32.mrb[4].mxu1 }
 0x136   : > { %v2078_v36 = vpop.f32.mrb[5].mxu1 }
 0x139   : > { %v2080_v37 = vpop.f32.mrb[6].mxu1 }
 0x13a   : > { %v2082_v38 = vpop.f32.mrb[7].mxu1 }
 0x13d   : > { %v2084_v39 = vpop.f32.mrb[8].mxu1 }
 0x13e   : > { %v2086_v40 = vpop.f32.mrb[9].mxu1 }
 0x141   : > { %v2088_v41 = vpop.f32.mrb[10].mxu1 }
 0x142   : > { %v2090_v42 = vpop.f32.mrb[11].mxu1 }
 0x145   : > { %v2093_v43 = vpop.f32.mrb[12].mxu1 }
 0x146   : > { %v2095_v44 = vpop.f32.mrb[13].mxu1 }
 0x149   : > { %v2098_v46 = vpop.f32.mrb[14].mxu1 }
 0x14a   : > { %v2100_v47 = vpop.f32.mrb[15].mxu1 }
 0x1b4   : > { %v1488_v4 = vpop.f32.mrb[0].mxu0 }
 0x1b5   : > { %v848_v5 = vmul.f32 %v1514_v31, %v1488_v4  ;;  %v557_v6 = vpop.f32.mrb[1].mxu0  ;;  %v941_v4 = vld [vmem:[#allocation2 + $0x48] sm:$0xff] }
 0x1b6   : > { %v847_v7 = vmul.f32 %v768_v32, %v557_v6 }
 0x1b8   : > { %v1624_v8 = vpack.c.bf16 %v848_v5, %v847_v7  ;;  %v1491_v10 = vpop.f32.mrb[2].mxu0  ;;  %v940_v5 = vld [vmem:[#allocation2 + $0x40] sm:$0xff] }
 0x1b9   : > { %v850_v11 = vmul.f32 %v1517_v33, %v1491_v10  ;;  %v567_v12 = vpop.f32.mrb[3].mxu0 }
 0x1ba   : > { %v849_v13 = vmul.f32 %v778_v34, %v567_v12  ;;  %1625 = vmatprep.subr.bf16.mxu1 %v1624_v8  ;;  %v942_v12 = vld [vmem:[#allocation2 + $0x50] sm:$0xff] }
 0x1bb   : > { %1627 = vmatpush3.bf16.msra.mxu1 %v1624_v8 }
 0x1bc   : > { %v1628_v9 = vpack.c.bf16 %v850_v11, %v849_v13  ;;  %v1494_v14 = vpop.f32.mrb[4].mxu0  ;;  %v943_v11 = vld [vmem:[#allocation2 + $0x58] sm:$0xff] }
 0x1bd   : > { %v852_v15 = vmul.f32 %v2076_v35, %v1494_v14  ;;  %v577_v17 = vpop.f32.mrb[5].mxu0 }
 0x1be   : > { %v851_v18 = vmul.f32 %v2078_v36, %v577_v17  ;;  %1629 = vmatprep.subr.bf16.mxu1 %v1628_v9  ;;  %v945_v17 = vld [vmem:[#allocation2 + $0x68] sm:$0xff] }
 0x1bf   : > { %1631 = vmatpush3.bf16.msra.mxu1 %v1628_v9 }
 0x1c0   : > { %v1632_v19 = vpack.c.bf16 %v852_v15, %v851_v18  ;;  %v1497_v20 = vpop.f32.mrb[6].mxu0  ;;  %v944_v18 = vld [vmem:[#allocation2 + $0x60] sm:$0xff] }
 0x1c1   : > { %v854_v21 = vmul.f32 %v2080_v37, %v1497_v20  ;;  %v587_v22 = vpop.f32.mrb[7].mxu0 }
 0x1c2   : > { %v853_v23 = vmul.f32 %v2082_v38, %v587_v22  ;;  %1633 = vmatprep.subr.bf16.mxu1 %v1632_v19 }
 0x1c3   : > { %1635 = vmatpush3.bf16.msra.mxu1 %v1632_v19 }
 0x1c4   : > { %v1636_v24 = vpack.c.bf16 %v854_v21, %v853_v23  ;;  %v1500_v25 = vpop.f32.mrb[8].mxu0  ;;  %v947_v23 = vld [vmem:[#allocation2 + $0x78] sm:$0xff] }
 0x1c5   : > { %v856_v26 = vmul.f32 %v2084_v39, %v1500_v25  ;;  %v597_v27 = vpop.f32.mrb[9].mxu0 }
 0x1c6   : > { %v855_v28 = vmul.f32 %v2086_v40, %v597_v27  ;;  %1637 = vmatprep.subr.bf16.mxu1 %v1636_v24 }
 0x1c7   : > { %1639 = vmatpush3.bf16.msra.mxu1 %v1636_v24  ;;  %v946_v24 = vld [vmem:[#allocation2 + $0x70] sm:$0xff] }
 0x1c8   : > { %v1640_v29 = vpack.c.bf16 %v856_v26, %v855_v28  ;;  %v1503_v30 = vpop.f32.mrb[10].mxu0 }
 0x1c9   : > { %v858_v31 = vmul.f32 %v2088_v41, %v1503_v30  ;;  %v607_v32 = vpop.f32.mrb[11].mxu0 }
 0x1ca   : > { %v857_v33 = vmul.f32 %v2090_v42, %v607_v32  ;;  %1641 = vmatprep.subr.bf16.mxu1 %v1640_v29 }
 0x1cb   : > { %1643 = vmatpush3.bf16.msra.mxu1 %v1640_v29 }
 0x1cc   : > { %v1644_v34 = vpack.c.bf16 %v858_v31, %v857_v33  ;;  %v1506_v35 = vpop.f32.mrb[12].mxu0 }
 0x1cd   : > { %v860_v36 = vmul.f32 %v2093_v43, %v1506_v35  ;;  %v617_v37 = vpop.f32.mrb[13].mxu0  ;;  %v933_v43 = vld [vmem:[#allocation2 + $0x8] sm:$0xff] }
 0x1ce   : > { %v859_v38 = vmul.f32 %v2095_v44, %v617_v37  ;;  %1645 = vmatprep.subr.bf16.mxu1 %v1644_v34  ;;  %v932_v44 = vld [vmem:[#allocation2] sm:$0xff] }
 0x1cf   : > { %1647 = vmatpush3.bf16.msra.mxu1 %v1644_v34 }
 0x1d0   : > { %v1648_v39 = vpack.c.bf16 %v860_v36, %v859_v38  ;;  %v1509_v40 = vpop.f32.mrb[14].mxu0 }
 0x1d1   : > { %v862_v45 = vmul.f32 %v2098_v46, %v1509_v40  ;;  %v627_v48 = vpop.f32.mrb[15].mxu0 }
 0x1d2   : > { %v861_v41 = vmul.f32 %v2100_v47, %v627_v48  ;;  %1649 = vmatprep.subr.bf16.mxu1 %v1648_v39 }
 0x1d3   : > { %1651 = vmatpush3.bf16.msra.mxu1 %v1648_v39 }
 0x1d4   : > { %v1652_v42 = vpack.c.bf16 %v862_v45, %v861_v41 }
 0x1d6   : > { %1653 = vmatprep.subr.bf16.mxu1 %v1652_v42 }
 0x1d7   : > { %1655 = vmatpush3.bf16.msra.mxu1 %v1652_v42 }
 0x1da   : > { %1569 = vmatmul.mubr.msk.f32.vlgmr.msra.gmra.mrb[16].mxu1 %vm885_vm2, %v1828_v16 }
 0x1db   : > { %1571 = vmatprep.mubr.msk.f32.mxu1 %vm886_vm3, %v1828_v16 }
 0x1de   : > { %1572 = vmatmul.mubr.msk.f32.gmra.mrb[18].mxu1 %vm887_vm4, %v1828_v16 }
 0x1df   : > { %1574 = vmatprep.mubr.msk.f32.mxu1 %vm888_vm5, %v1828_v16 }
 0x1e2   : > { %1575 = vmatmul.mubr.msk.f32.gmra.mrb[20].mxu1 %vm889_vm6, %v1828_v16 }
 0x1e3   : > { %1577 = vmatprep.mubr.msk.f32.mxu1 %vm890_vm7, %v1828_v16 }
 0x1e6   : > { %1578 = vmatmul.mubr.msk.f32.gmra.mrb[22].mxu1 %vm891_vm8, %v1828_v16 }
 0x1e7   : > { %1580 = vmatprep.mubr.msk.f32.mxu1 %vm892_vm9, %v1828_v16 }
 0x1ea   : > { %1581 = vmatmul.mubr.msk.f32.gmra.mrb[24].mxu1 %vm893_vm10, %v1828_v16 }
 0x1eb   : > { %1583 = vmatprep.mubr.msk.f32.mxu1 %vm894_vm11, %v1828_v16 }
 0x1ee   : > { %1584 = vmatmul.mubr.msk.f32.gmra.mrb[26].mxu1 %vm895_vm12, %v1828_v16 }
 0x1ef   : > { %1586 = vmatprep.mubr.msk.f32.mxu1 %vm896_vm13, %v1828_v16 }
 0x1f2   : > { %1587 = vmatmul.mubr.msk.f32.gmra.mrb[28].mxu1 %vm897_vm14, %v1828_v16 }
 0x1f3   : > { %1589 = vmatprep.mubr.msk.f32.mxu1 %vm898_vm15, %v1828_v16 }
 0x1f6   : > { %1590 = vmatmul.mubr.msk.f32.gmra.mrb[30].mxu1 %vm899_vm0, %v1828_v16 }
 0x2ad   : > { %v1570_v46 = vpop.f32.mrb[16].mxu1 }
 0x2ae   : > { %v1094_v47 = vadd.f32 %v1570_v46, %v933_v43  ;;  %v1014_v49 = vpop.f32.mrb[17].mxu1 }
 0x2af   : > { %v1093_v50 = vadd.f32 %v1014_v49, %v932_v44 }
 0x2b0   : > { %1110 = vst [vmem:[#allocation2 + $0x8] sm:$0xff] %v1094_v47 }
 0x2b1   : > { %1109 = vst [vmem:[#allocation2] sm:$0xff] %v1093_v50  ;;  %v1573_v54 = vpop.f32.mrb[18].mxu1 }
 0x2b2   : > { %v1096_v55 = vadd.f32 %v1573_v54, %v935_v51  ;;  %v1024_v56 = vpop.f32.mrb[19].mxu1 }
 0x2b3   : > { %v1095_v57 = vadd.f32 %v1024_v56, %v934_v53 }
 0x2b4   : > { %1112 = vst [vmem:[#allocation2 + $0x18] sm:$0xff] %v1096_v55 }
 0x2b5   : > { %1111 = vst [vmem:[#allocation2 + $0x10] sm:$0xff] %v1095_v57  ;;  %v1576_v16 = vpop.f32.mrb[20].mxu1 }
 0x2b6   : > { %v1098_v59 = vadd.f32 %v1576_v16, %v937_v58  ;;  %v1034_v60 = vpop.f32.mrb[21].mxu1 }
 0x2b7   : > { %v1097_v61 = vadd.f32 %v1034_v60, %v936_v52  ;;  %v1131_v30 = vld [vmem:[#allocation2 + $0x8] sm:$0xff] (!%p1366_p6) }
 0x2b8   : > { %1114 = vst [vmem:[#allocation2 + $0x28] sm:$0xff] %v1098_v59  ;;  %v1130_v29 = vld [vmem:[#allocation2] sm:$0xff] (!%p1366_p6)  ;;  %1147 = vst [vmem:[%s1971_s18 + $0x8] sm:$0xff] (!%p1366_p6), %v1131_v30 }
 0x2b9   : > { %1113 = vst [vmem:[#allocation2 + $0x20] sm:$0xff] %v1097_v61  ;;  %v1579_v0 = vpop.f32.mrb[22].mxu1  ;;  %1146 = vst [vmem:[%s1971_s18] sm:$0xff] (!%p1366_p6), %v1130_v29 }
 0x2ba   : > { %v1100_v1 = vadd.f32 %v1579_v0, %v939_v62  ;;  %v1044_v2 = vpop.f32.mrb[23].mxu1 }
 0x2bb   : > { %v1099_v3 = vadd.f32 %v1044_v2, %v938_v63  ;;  %v1133_v32 = vld [vmem:[#allocation2 + $0x18] sm:$0xff] (!%p1366_p6) }
 0x2bc   : > { %1116 = vst [vmem:[#allocation2 + $0x38] sm:$0xff] %v1100_v1  ;;  %v1132_v31 = vld [vmem:[#allocation2 + $0x10] sm:$0xff] (!%p1366_p6)  ;;  %1149 = vst [vmem:[%s1971_s18 + $0x18] sm:$0xff] (!%p1366_p6), %v1133_v32 }
 0x2bd   : > { %1115 = vst [vmem:[#allocation2 + $0x30] sm:$0xff] %v1099_v3  ;;  %v1582_v6 = vpop.f32.mrb[24].mxu1  ;;  %1148 = vst [vmem:[%s1971_s18 + $0x10] sm:$0xff] (!%p1366_p6), %v1132_v31 }
 0x2be   : > { %v1102_v7 = vadd.f32 %v1582_v6, %v941_v4  ;;  %v1054_v8 = vpop.f32.mrb[25].mxu1 }
 0x2bf   : > { %v1101_v10 = vadd.f32 %v1054_v8, %v940_v5  ;;  %v1135_v34 = vld [vmem:[#allocation2 + $0x28] sm:$0xff] (!%p1366_p6) }
 0x2c0   : > { %1118 = vst [vmem:[#allocation2 + $0x48] sm:$0xff] %v1102_v7  ;;  %v1134_v33 = vld [vmem:[#allocation2 + $0x20] sm:$0xff] (!%p1366_p6)  ;;  %1151 = vst [vmem:[%s1971_s18 + $0x28] sm:$0xff] (!%p1366_p6), %v1135_v34 }
 0x2c1   : > { %1117 = vst [vmem:[#allocation2 + $0x40] sm:$0xff] %v1101_v10  ;;  %v1585_v13 = vpop.f32.mrb[26].mxu1  ;;  %1150 = vst [vmem:[%s1971_s18 + $0x20] sm:$0xff] (!%p1366_p6), %v1134_v33 }
 0x2c2   : > { %v1104_v9 = vadd.f32 %v1585_v13, %v943_v11  ;;  %v1064_v14 = vpop.f32.mrb[27].mxu1 }
 0x2c3   : > { %v1103_v15 = vadd.f32 %v1064_v14, %v942_v12  ;;  %v1137_v36 = vld [vmem:[#allocation2 + $0x38] sm:$0xff] (!%p1366_p6) }
 0x2c4   : > { %1120 = vst [vmem:[#allocation2 + $0x58] sm:$0xff] %v1104_v9  ;;  %v1136_v35 = vld [vmem:[#allocation2 + $0x30] sm:$0xff] (!%p1366_p6)  ;;  %1153 = vst [vmem:[%s1971_s18 + $0x38] sm:$0xff] (!%p1366_p6), %v1137_v36 }
 0x2c5   : > { %1119 = vst [vmem:[#allocation2 + $0x50] sm:$0xff] %v1103_v15  ;;  %v1588_v19 = vpop.f32.mrb[28].mxu1  ;;  %1152 = vst [vmem:[%s1971_s18 + $0x30] sm:$0xff] (!%p1366_p6), %v1136_v35 }
 0x2c6   : > { %v1106_v20 = vadd.f32 %v1588_v19, %v945_v17  ;;  %v1074_v21 = vpop.f32.mrb[29].mxu1 }
 0x2c7   : > { %v1105_v22 = vadd.f32 %v1074_v21, %v944_v18  ;;  %1129 = sbr.rel (%p1366_p6) target bundleno = 726 (0x2d6), region = 48  ;;  %v1139_v38 = vld [vmem:[#allocation2 + $0x48] sm:$0xff] (!%p1366_p6) }
 0x2c8   : > { %1122 = vst [vmem:[#allocation2 + $0x68] sm:$0xff] %v1106_v20  ;;  %v1138_v37 = vld [vmem:[#allocation2 + $0x40] sm:$0xff] (!%p1366_p6)  ;;  %1155 = vst [vmem:[%s1971_s18 + $0x48] sm:$0xff] (!%p1366_p6), %v1139_v38 }
 0x2c9   : > { %1121 = vst [vmem:[#allocation2 + $0x60] sm:$0xff] %v1105_v22  ;;  %v1591_v25 = vpop.f32.mrb[30].mxu1  ;;  %1154 = vst [vmem:[%s1971_s18 + $0x40] sm:$0xff] (!%p1366_p6), %v1138_v37 }
 0x2ca   : > { %v1108_v26 = vadd.f32 %v1591_v25, %v947_v23  ;;  %v1084_v27 = vpop.f32.mrb[31].mxu1 }
 0x2cb   : > { %v1107_v28 = vadd.f32 %v1084_v27, %v946_v24  ;;  %v1141_v40 = vld [vmem:[#allocation2 + $0x58] sm:$0xff] (!%p1366_p6) }
 0x2cc   : > { %1124 = vst [vmem:[#allocation2 + $0x78] sm:$0xff] %v1108_v26  ;;  %v1140_v39 = vld [vmem:[#allocation2 + $0x50] sm:$0xff] (!%p1366_p6)  ;;  %1157 = vst [vmem:[%s1971_s18 + $0x58] sm:$0xff] (!%p1366_p6), %v1141_v40 }
 0x2cd   : > { %1123 = vst [vmem:[#allocation2 + $0x70] sm:$0xff] %v1107_v28  ;;  %1156 = vst [vmem:[%s1971_s18 + $0x50] sm:$0xff] (!%p1366_p6), %v1140_v39 }
 0x2cf   : > { %v1143_v48 = vld [vmem:[#allocation2 + $0x68] sm:$0xff] }
 0x2d0   : > { %v1142_v45 = vld [vmem:[#allocation2 + $0x60] sm:$0xff]  ;;  %1159 = vst [vmem:[%s1971_s18 + $0x68] sm:$0xff] %v1143_v48 }
 0x2d1   : > { %1158 = vst [vmem:[%s1971_s18 + $0x60] sm:$0xff] %v1142_v45 }
 0x2d3   : > { %v1145_v42 = vld [vmem:[#allocation2 + $0x78] sm:$0xff] }
 0x2d4   : > { %v1144_v41 = vld [vmem:[#allocation2 + $0x70] sm:$0xff]  ;;  %1161 = vst [vmem:[%s1971_s18 + $0x78] sm:$0xff] %v1145_v42 }
 0x2d5   : > { %1160 = vst [vmem:[%s1971_s18 + $0x70] sm:$0xff] %v1144_v41 }
 0x2d6 PF: > { %s1656_s22 = scalar_select %p1928_p10, [#allocation4], [#allocation10] }
 0x2d7   : > { %s2346_s29 = smov (!%p1928_p10, %s1915_s29), 0  ;;  %s1177_s11 = sshll.u32 %s1971_s18, 4  ;;  %s2269_s11 = int_to_ptr.vmem [resolvable:$true] %s1177_s11 }
 0x2d8   : > { %s1170_s30 = sld [smem:[%s1656_s22 + %s2346_s29]]  ;;  %s2335_s21 = sand.u32 1, %s1812_s26  }
 0x2d9   : > { %s2278_s27 = scalar_lea.sflag [#allocation9], %s2335_s21  ;;  %s1756_s17 = scalar_lea.vmem %s2269_s11, 2048 }
 0x2da   : > { %p1757_p7 = scmp.ne.s32.totalorder %s2269_s11, %s1756_s17  ;;  %s1829_s29 = smov [#allocation8]  }
 0x2db   : > { %s1760_s18 = sshll.u32 %s1829_s29, 4  ;;  %s1761_s18 = int_to_ptr.vmem [resolvable:$false] %s1760_s18 }
 0x2dc   : > { %p1758_p8 = pnand %p1757_p7, %p1928_p10  ;;  %s1762_s0 = scalar_lea.vmem %s1761_s18, 4096 }
 0x2dd   : > { %p1763_p11 = scmp.lt.s32.totalorder %s2269_s11, %s1761_s18  ;;  %p1764_p13 = scmp.lt.s32.totalorder %s1762_s0, %s1756_s17 }
 0x2de   : > { %s1372_s12 = sshll.u32 %s1170_s30, 11  ;;  %p1759_p9 = pneg %p1758_p8 }
 0x2df   : > { %s2274_s20 = scalar_lea.hbm %s2325_s9, %s1372_s12  ;;  %p1765_p0 = por %p1764_p13, %p1763_p11 }
 0x2e1   : > { %p1766_p1 = pnand %p1765_p0, %p1759_p9 }
 0x2e3   : > { %1769 = shalt.err (!%p1766_p1)
}
 0x2e4   : > { %s1770_s1 = scalar_lea.hbm %s2274_s20, 2048  ;;  %s1774_s25 = scalar_lea.hbm %s2325_s9, 6144 }
 0x2e5   : > { %p1771_p2 = scmp.ne.s32.totalorder %s2274_s20, %s1770_s1  ;;  %p1775_p5 = scmp.lt.u32.totalorder %s2274_s20, %s2325_s9 }
 0x2e6   : > { %p1776_p6 = scmp.lt.u32.totalorder %s1774_s25, %s1770_s1  ;;  %p1778_p8 = scmp.lt.u32.totalorder %s1770_s1, %s2274_s20 }
 0x2e7   : > { %p1772_p3 = pnand %p1771_p2, %p1928_p10 }
 0x2e8   : > { %p1777_p7 = por %p1776_p6, %p1775_p5 }
 0x2e9   : > { %p1773_p4 = pneg %p1772_p3 }
 0x2ea   : > { %p1779_p9 = por %p1778_p8, %p1777_p7 }
 0x2ec   : > { %p1780_p11 = pnand %p1779_p9, %p1773_p4 }
 0x2ee   : > { %1783 = shalt.err (!%p1780_p11)
}
 0x2ef   : > { %s1830_s22 = smov 128   ;;  %s1831_s30 = smov 8  }
 0x2f0   : > { %1658 = dma.vmem_to_hbm [thread:$0]  (%p1928_p10), %s2269_s11, 2048, %s2274_s20, %s2278_s27, %s1830_s22, %s1830_s22, %s1831_s30  }
 0x2f1 PF: > { %p1664_p13 = scmp.ge.s32.totalorder %s1820_s28, 2  ;;  %s1192_s12 = sand.u32 1, %s1808_s3  }
 0x2f2   : > { %s1193_s15 = scalar_lea.sflag [#allocation9], %s1192_s12 }
 0x2f3   : > { %p1661_p0 = pnand %p1664_p13, %p1933_p12 }
 0x2f5   : > { %1803 = dma.done.wait (!%p1661_p0), %s1193_s15, 2048  }
 0x2f6   : > { %1805 = vsyncadd (!%p1661_p0), %s1193_s15, 4294965248  ;;  %s2336_s16 = sld [smem:[#allocation13_spill]]  ;;  %s2337_s27 = sld [smem:[#allocation14_spill]] }
 0x2f7   : > { %p37_p1 = scmp.ge.s32.totalorder %s1919_s10, 15   ;;  %s2338_s3 = smov %s1812_s26 }
 0x2f8   : > { %s2340_s28 = smov %s1919_s10 }
 0x2f9   :  { %39 = sbr.rel (!%p37_p1) target bundleno = 49 (0x31), region = 92 }
 0x2fc   : > { %s2339_s26 = smov %s2336_s16 }
 0x300   :  { %1198 = vsyncpa [#allocation9], 1 }
 0x301   :  { %1200 = vsyncpa [#allocation9 + $0x1], 1 }

</bundles_post_ra>
